<compile_context>
chip_gen: v7x
topology: tpu7x:2x2x1
jax: 0.10.0
libtpu: 0.0.40
codegen_flags: <defaults>
</compile_context>

<pallas_src>
import functools

import jax
import jax.numpy as jnp
from jax.experimental import pallas as pl
from jax.experimental.pallas import tpu as pltpu

LATENT_SIZE = 100
PRIV_SIZE = 4
HIDDEN = (64, 32)            # priv_decoder_shape
NEG_SLOPE = 0.01             # nn.LeakyReLU default negative_slope


def _leaky_relu(x):
    return jnp.where(x >= 0, x, NEG_SLOPE * x)


def _round_up(x, m):
    return ((x + m - 1) // m) * m


def _mlp_kernel(x_ref, w1_ref, b1_ref, w2_ref, b2_ref, w3_ref, b3_ref, o_ref):
    """One batch tile: Linear->LeakyReLU->Linear->LeakyReLU->Linear, fused."""
    # Load biases once at the top (JAX does not CSE broadcast_in_dim; keep the
    # broadcasts out of the per-layer expressions).
    b1 = b1_ref[...]
    b2 = b2_ref[...]
    b3 = b3_ref[...]

    cdt = w1_ref.dtype  # compute (MXU input) dtype: bf16 or f32
    x = x_ref[...]

    # Accumulate in f32 on the MXU; bias add + LeakyReLU in f32 on the VPU.
    h1 = jnp.dot(x, w1_ref[...], preferred_element_type=jnp.float32) + b1
    h1 = _leaky_relu(h1)
    h2 = jnp.dot(h1.astype(cdt), w2_ref[...], preferred_element_type=jnp.float32) + b2
    h2 = _leaky_relu(h2)
    out = jnp.dot(h2.astype(cdt), w3_ref[...], preferred_element_type=jnp.float32) + b3

    o_ref[...] = out.astype(o_ref.dtype)


@functools.partial(jax.jit, static_argnames=("block_batch", "compute_dtype"))
def belief_decoder_mlp(latent, params, *, block_batch=512, compute_dtype=jnp.bfloat16):
    """Forward pass of BeliefDecoderMLP (mode='base') via a batch-tiled Pallas call.

    latent: (B, latent_size) f32.  params: (w1,b1,w2,b2,w3,b3) with weights
    stored (in_features, out_features) so the kernel computes x @ W + b, which
    matches PyTorch's x @ W.T with W of shape (out, in).

    NOTE: at tiny batch (e.g. a single env step) this kernel is pure launch
    overhead; batch env steps or let XLA fuse the three dots instead.
    """
    w1, b1, w2, b2, w3, b3 = params
    B, L = latent.shape
    priv = w3.shape[1]

    # Cast HBM-streamed operand and weights to the compute dtype; biases f32.
    x = latent.astype(compute_dtype)
    w1c, w2c, w3c = (w.astype(compute_dtype) for w in (w1, w2, w3))
    b1f, b2f, b3f = (b.astype(jnp.float32) for b in (b1, b2, b3))

    # Batch tile: multiple of 8 sublanes; don't over-tile tiny batches.
    tb = min(block_batch, _round_up(max(B, 1), 8))
    grid = pl.cdiv(B, tb)
    b_pad = grid * tb
    if b_pad != B:
        # Pad with zeros so the last tile never touches garbage rows; padded
        # rows just produce bias-valued outputs that we slice away below.
        x = jnp.pad(x, ((0, b_pad - B), (0, 0)))

    in_bytes = jnp.dtype(compute_dtype).itemsize
    h1n, h2n = w1.shape[1], w2.shape[1]
    cost = pl.CostEstimate(
        flops=2 * B * (L * h1n + h1n * h2n + h2n * priv),
        transcendentals=0,
        bytes_accessed=B * (L * in_bytes + priv * 4)
        + (w1.size + w2.size + w3.size) * in_bytes
        + (b1.size + b2.size + b3.size) * 4,
    )

    def _resident(shape):
        # Constant block index -> loaded once, stays resident in VMEM.
        return pl.BlockSpec(shape, lambda i: (0, 0))

    out = pl.pallas_call(
        _mlp_kernel,
        out_shape=jax.ShapeDtypeStruct((b_pad, priv), jnp.float32),
        grid=(grid,),
        in_specs=[
            pl.BlockSpec((tb, L), lambda i: (i, 0)),      # latent: streamed tiles
            _resident(w1c.shape), _resident(b1f.shape),
            _resident(w2c.shape), _resident(b2f.shape),
            _resident(w3c.shape), _resident(b3f.shape),
        ],
        out_specs=pl.BlockSpec((tb, priv), lambda i: (i, 0)),
        compiler_params=pltpu.CompilerParams(
            dimension_semantics=("parallel",),            # megacore sharding on v7x
        ),
        cost_estimate=cost,
    )(x, w1c, b1f, w2c, b2f, w3c, b3f)

    return out[:B]


def init_params(key, latent_size=LATENT_SIZE, hidden=HIDDEN, priv_size=PRIV_SIZE):
    """Deterministic synthetic parameters (shapes match the PyTorch module).

    rslgym MLP([64,32], LeakyReLU, 100, 4) -> Linear(100,64), Linear(64,32),
    Linear(32,4). Weights stored transposed (in, out); biases kept 2-D (1, out)
    for clean broadcasting inside the kernel.
    """
    dims = [latent_size, *hidden, priv_size]
    params = []
    for i in range(len(dims) - 1):
        fan_in, fan_out = dims[i], dims[i + 1]
        key, wk, bk = jax.random.split(key, 3)
        scale = (1.0 / jnp.sqrt(2.0)) / jnp.sqrt(jnp.float32(fan_in))
        w = jax.random.normal(wk, (fan_in, fan_out), jnp.float32) * scale
        b = jax.random.normal(bk, (1, fan_out), jnp.float32) * 0.01
        params.extend([w, b])
    return tuple(params)


def _reference_forward(latent, params):
    """Pure-JAX f32 reference for correctness checking."""
    w1, b1, w2, b2, w3, b3 = params
    h1 = _leaky_relu(latent @ w1 + b1)
    h2 = _leaky_relu(h1 @ w2 + b2)
    return h2 @ w3 + b3


# TODO(synk): mode='separate' branch (four 1-in -> priv_size//4 Linear heads)
# not implemented; default mode='base' is what forward() exercises. The
# EmpiricalNormalization / loss helpers are not part of forward() either.

if __name__ == "__main__":
    key = jax.random.PRNGKey(0)
    pkey, xkey = jax.random.split(key)
    params = init_params(pkey)

    batch = 16
    latent = jax.random.normal(xkey, (batch, LATENT_SIZE), jnp.float32)
    ref = _reference_forward(latent, params)

    # f32 compute path: bit-faithful to the PyTorch f32 reference.
    out_f32 = jax.block_until_ready(
        belief_decoder_mlp(latent, params, compute_dtype=jnp.float32)
    )
    assert out_f32.shape == (batch, PRIV_SIZE), out_f32.shape
    assert jnp.allclose(out_f32, ref, atol=1e-5, rtol=1e-5), "f32 mismatch vs reference"

    # Default bf16-stream path: same math with bf16 inputs / f32 accumulation,
    # so compare with a loosened tolerance.
    out_bf16 = jax.block_until_ready(belief_decoder_mlp(latent, params))
    assert out_bf16.shape == (batch, PRIV_SIZE), out_bf16.shape
    assert jnp.allclose(out_bf16, ref, atol=5e-2, rtol=5e-2), "bf16 mismatch vs reference"

    # Exercise the ragged-batch pad/slice path (B not a multiple of the tile).
    latent_odd = latent[:13]
    out_odd = jax.block_until_ready(
        belief_decoder_mlp(latent_odd, params, compute_dtype=jnp.float32)
    )
    assert out_odd.shape == (13, PRIV_SIZE), out_odd.shape
    assert jnp.allclose(out_odd, ref[:13], atol=1e-5, rtol=1e-5), "padded-batch mismatch"

    print("KERNEL_OK")
</pallas_src>

<mosaic_0001>
module attributes {stable_mosaic.version = 11 : i64} {
  func.func @_mlp_kernel(%arg0: i32, %arg1: memref<16x100xf32, #tpu.memory_space<vmem>>, %arg2: memref<100x64xf32, #tpu.memory_space<vmem>>, %arg3: memref<1x64xf32, #tpu.memory_space<vmem>>, %arg4: memref<64x32xf32, #tpu.memory_space<vmem>>, %arg5: memref<1x32xf32, #tpu.memory_space<vmem>>, %arg6: memref<32x4xf32, #tpu.memory_space<vmem>>, %arg7: memref<1x4xf32, #tpu.memory_space<vmem>>, %arg8: memref<16x4xf32, #tpu.memory_space<vmem>>) attributes {dimension_semantics = [#tpu.dimension_semantics<parallel>], iteration_bounds = array<i64: 1>, scalar_prefetch = 0 : i64, scratch_operands = 0 : i64, tpu.core_type = #tpu.core_type<tc>, window_params = [{transform_indices = @transform_0, window_bounds = array<i64: 16, 100>}, {pipeline_mode = #tpu.pipeline_mode<synchronous>, transform_indices = @transform_1, window_bounds = array<i64: 100, 64>}, {pipeline_mode = #tpu.pipeline_mode<synchronous>, transform_indices = @transform_2, window_bounds = array<i64: 1, 64>}, {pipeline_mode = #tpu.pipeline_mode<synchronous>, transform_indices = @transform_3, window_bounds = array<i64: 64, 32>}, {pipeline_mode = #tpu.pipeline_mode<synchronous>, transform_indices = @transform_4, window_bounds = array<i64: 1, 32>}, {pipeline_mode = #tpu.pipeline_mode<synchronous>, transform_indices = @transform_5, window_bounds = array<i64: 32, 4>}, {pipeline_mode = #tpu.pipeline_mode<synchronous>, transform_indices = @transform_6, window_bounds = array<i64: 1, 4>}, {transform_indices = @transform_7, window_bounds = array<i64: 16, 4>}]} {
    %c0 = arith.constant 0 : index
    %c0_0 = arith.constant 0 : index
    %0 = vector.load %arg3[%c0, %c0_0] : memref<1x64xf32, #tpu.memory_space<vmem>>, vector<1x64xf32>
    %c0_1 = arith.constant 0 : index
    %c0_2 = arith.constant 0 : index
    %1 = vector.load %arg5[%c0_1, %c0_2] : memref<1x32xf32, #tpu.memory_space<vmem>>, vector<1x32xf32>
    %c0_3 = arith.constant 0 : index
    %c0_4 = arith.constant 0 : index
    %2 = vector.load %arg7[%c0_3, %c0_4] : memref<1x4xf32, #tpu.memory_space<vmem>>, vector<1x4xf32>
    %c0_5 = arith.constant 0 : index
    %c0_6 = arith.constant 0 : index
    %3 = vector.load %arg1[%c0_5, %c0_6] : memref<16x100xf32, #tpu.memory_space<vmem>>, vector<16x100xf32>
    %c0_7 = arith.constant 0 : index
    %c0_8 = arith.constant 0 : index
    %4 = vector.load %arg2[%c0_7, %c0_8] : memref<100x64xf32, #tpu.memory_space<vmem>>, vector<100x64xf32>
    %cst = arith.constant dense<0.000000e+00> : vector<16x64xf32>
    %5 = tpu.matmul %3, %4, %cst {dimension_numbers = #tpu.dot_dimension_numbers<[1], [0], [0], [1], [0, 0, 1, 1], [], []>} : vector<16x100xf32>, vector<100x64xf32>, vector<16x64xf32> -> vector<16x64xf32>
    %6 = vector.broadcast %0 : vector<1x64xf32> to vector<16x64xf32>
    %7 = arith.addf %5, %6 : vector<16x64xf32>
    %cst_9 = arith.constant 0.000000e+00 : f32
    %8 = vector.broadcast %cst_9 : f32 to vector<16x64xf32>
    %9 = arith.cmpf oge, %7, %8 : vector<16x64xf32>
    %cst_10 = arith.constant 0.00999999977 : f32
    %10 = vector.broadcast %cst_10 : f32 to vector<16x64xf32>
    %11 = arith.mulf %10, %7 : vector<16x64xf32>
    %12 = arith.select %9, %7, %11 : vector<16x64xi1>, vector<16x64xf32>
    %c0_11 = arith.constant 0 : index
    %c0_12 = arith.constant 0 : index
    %13 = vector.load %arg4[%c0_11, %c0_12] : memref<64x32xf32, #tpu.memory_space<vmem>>, vector<64x32xf32>
    %cst_13 = arith.constant dense<0.000000e+00> : vector<16x32xf32>
    %14 = tpu.matmul %12, %13, %cst_13 {dimension_numbers = #tpu.dot_dimension_numbers<[1], [0], [0], [1], [0, 0, 1, 1], [], []>} : vector<16x64xf32>, vector<64x32xf32>, vector<16x32xf32> -> vector<16x32xf32>
    %15 = vector.broadcast %1 : vector<1x32xf32> to vector<16x32xf32>
    %16 = arith.addf %14, %15 : vector<16x32xf32>
    %cst_14 = arith.constant 0.000000e+00 : f32
    %17 = vector.broadcast %cst_14 : f32 to vector<16x32xf32>
    %18 = arith.cmpf oge, %16, %17 : vector<16x32xf32>
    %cst_15 = arith.constant 0.00999999977 : f32
    %19 = vector.broadcast %cst_15 : f32 to vector<16x32xf32>
    %20 = arith.mulf %19, %16 : vector<16x32xf32>
    %21 = arith.select %18, %16, %20 : vector<16x32xi1>, vector<16x32xf32>
    %c0_16 = arith.constant 0 : index
    %c0_17 = arith.constant 0 : index
    %22 = vector.load %arg6[%c0_16, %c0_17] : memref<32x4xf32, #tpu.memory_space<vmem>>, vector<32x4xf32>
    %cst_18 = arith.constant dense<0.000000e+00> : vector<16x4xf32>
    %23 = tpu.matmul %21, %22, %cst_18 {dimension_numbers = #tpu.dot_dimension_numbers<[1], [0], [0], [1], [0, 0, 1, 1], [], []>} : vector<16x32xf32>, vector<32x4xf32>, vector<16x4xf32> -> vector<16x4xf32>
    %24 = vector.broadcast %2 : vector<1x4xf32> to vector<16x4xf32>
    %25 = arith.addf %23, %24 : vector<16x4xf32>
    %c0_19 = arith.constant 0 : index
    %c0_20 = arith.constant 0 : index
    %26 = vector.load %arg8[%c0_19, %c0_20] : memref<16x4xf32, #tpu.memory_space<vmem>>, vector<16x4xf32>
    tpu.vector_store %arg8[%c0_19, %c0_20], %25 {strides = array<i32>} : memref<16x4xf32, #tpu.memory_space<vmem>>, vector<16x4xf32>,
    return
  }
  func.func @transform_0(%arg0: i32) -> (i32, i32) {
    %c0_i32 = arith.constant 0 : i32
    %c0_i32_0 = arith.constant 0 : i32
    return %arg0, %c0_i32 : i32, i32
  }
  func.func @transform_1(%arg0: i32) -> (i32, i32) {
    %c0_i32 = arith.constant 0 : i32
    %c0_i32_0 = arith.constant 0 : i32
    %c0_i32_1 = arith.constant 0 : i32
    return %c0_i32, %c0_i32_0 : i32, i32
  }
  func.func @transform_2(%arg0: i32) -> (i32, i32) {
    %c0_i32 = arith.constant 0 : i32
    %c0_i32_0 = arith.constant 0 : i32
    %c0_i32_1 = arith.constant 0 : i32
    return %c0_i32, %c0_i32_0 : i32, i32
  }
  func.func @transform_3(%arg0: i32) -> (i32, i32) {
    %c0_i32 = arith.constant 0 : i32
    %c0_i32_0 = arith.constant 0 : i32
    %c0_i32_1 = arith.constant 0 : i32
    return %c0_i32, %c0_i32_0 : i32, i32
  }
  func.func @transform_4(%arg0: i32) -> (i32, i32) {
    %c0_i32 = arith.constant 0 : i32
    %c0_i32_0 = arith.constant 0 : i32
    %c0_i32_1 = arith.constant 0 : i32
    return %c0_i32, %c0_i32_0 : i32, i32
  }
  func.func @transform_5(%arg0: i32) -> (i32, i32) {
    %c0_i32 = arith.constant 0 : i32
    %c0_i32_0 = arith.constant 0 : i32
    %c0_i32_1 = arith.constant 0 : i32
    return %c0_i32, %c0_i32_0 : i32, i32
  }
  func.func @transform_6(%arg0: i32) -> (i32, i32) {
    %c0_i32 = arith.constant 0 : i32
    %c0_i32_0 = arith.constant 0 : i32
    %c0_i32_1 = arith.constant 0 : i32
    return %c0_i32, %c0_i32_0 : i32, i32
  }
  func.func @transform_7(%arg0: i32) -> (i32, i32) {
    %c0_i32 = arith.constant 0 : i32
    %c0_i32_0 = arith.constant 0 : i32
    return %arg0, %c0_i32 : i32, i32
  }
}

</mosaic_0001>

<bundles_post_ra>
// kernel: belief_decoder_mlp.1
= control target key start
LH: loop header
LB: loop body
LE: loop exit
PB: predicated region body
PF: predicated region fallthrough
CT: control target
= control target key end

     0   :  { %vm50_vm0 = vcmask 818176   ;;  %vm57_vm1 = vcmask 1043456   ;;  %vm156_vm4 = vcmask 523264   ;;  %vm254_vm7 = vcmask 261120   ;;  %s629_s1 = inlined_call_operand.vmem [shape: f32[100,64], index: 1, kind: input, shape index: {}]   ;;  %s630_s0 = inlined_call_operand.vmem [shape: f32[16,100], index: 0, kind: input, shape index: {}]   ;;  %s631_s3 = inlined_call_operand.vmem [shape: f32[64,32], index: 3, kind: input, shape index: {}]   ;;  %s632_s2 = inlined_call_operand.vmem [shape: f32[1,64], index: 2, kind: input, shape index: {}]   ;;  %s633_s5 = inlined_call_operand.vmem [shape: f32[32,4], index: 5, kind: input, shape index: {}]   ;;  %s634_s4 = inlined_call_operand.vmem [shape: f32[1,32], index: 4, kind: input, shape index: {}]   ;;  %s635_s6 = inlined_call_operand.vmem [shape: f32[1,4], index: 6, kind: input, shape index: {}]   ;;  %s636_s7 = inlined_call_operand.vmem [shape: f32[16,4], index: 7, kind: output, shape index: {}]  }
   0x1   :  { %v31_v0 = vld [vmem:[%s629_s1] sm:$0xff]  ;;  %v32_v1 = vld [vmem:[%s629_s1 + $0x8] sm:$0xff]  ;;  %v33_v2 = vld [vmem:[%s629_s1 + $0x10] sm:$0xff]  ;;  %vm336_vm8 = vcmask 31744  }
   0x2   :  { %v443_v3 = vpack.c.bf16 %v32_v1, %v31_v0  ;;  %v34_v4 = vld [vmem:[%s629_s1 + $0x18] sm:$0xff]  ;;  %v35_v6 = vld [vmem:[%s629_s1 + $0x20] sm:$0xff]  ;;  %v36_v7 = vld [vmem:[%s629_s1 + $0x28] sm:$0xff] }
   0x3   :  { %v447_v5 = vpack.c.bf16 %v34_v4, %v33_v2  ;;  %v29_v8 = vld [vmem:[%s630_s0] sm:$0xff]  ;;  %v451_v9 = vpack.c.bf16 %v36_v7, %v35_v6  ;;  %v143_v11 = vld [vmem:[%s631_s3 + $0x8] sm:$0xff]  ;;  %v144_v12 = vld [vmem:[%s631_s3 + $0x10] sm:$0xff] }
   0x4   :  { %444 = vmatprep.subr.bf16.mxu0 %v443_v3  ;;  %410 = vmatprep.mubr.msk.f32.mxu0 %vm50_vm0, %v29_v8  ;;  %v142_v10 = vld [vmem:[%s631_s3] sm:$0xff]  ;;  %v37_v13 = vld [vmem:[%s629_s1 + $0x30] sm:$0xff]  ;;  %v38_v14 = vld [vmem:[%s629_s1 + $0x38] sm:$0xff] }
   0x5   :  { %446 = vmatpush3.bf16.msra.mxu0 %v443_v3  ;;  %v467_v15 = vpack.c.bf16 %v143_v11, %v142_v10  ;;  %v145_v16 = vld [vmem:[%s631_s3 + $0x18] sm:$0xff]  ;;  %v455_v18 = vpack.c.bf16 %v38_v14, %v37_v13  ;;  %v39_v19 = vld [vmem:[%s629_s1 + $0x40] sm:$0xff]  ;;  %v40_v20 = vld [vmem:[%s629_s1 + $0x48] sm:$0xff] }
   0x6   :  { %448 = vmatprep.subr.bf16.mxu0 %v447_v5  ;;  %v471_v17 = vpack.c.bf16 %v145_v16, %v144_v12  ;;  %v459_v21 = vpack.c.bf16 %v40_v20, %v39_v19  ;;  %v41_v22 = vld [vmem:[%s629_s1 + $0x50] sm:$0xff]  ;;  %v42_v23 = vld [vmem:[%s629_s1 + $0x58] sm:$0xff]  ;;  %v43_v25 = vld [vmem:[%s629_s1 + $0x60] sm:$0xf] }
   0x7   :  { %468 = vmatprep.subr.bf16.mxu1 %v467_v15  ;;  %v463_v24 = vpack.c.bf16 %v42_v23, %v41_v22  ;;  %v30_v26 = vld [vmem:[%s630_s0 + $0x8] sm:$0xff]  ;;  %v146_v27 = vld [vmem:[%s631_s3 + $0x20] sm:$0xff]  ;;  %v148_v30 = vld [vmem:[%s631_s3 + $0x30] sm:$0xff] }
   0x8   :  { %470 = vmatpush3.bf16.msra.mxu1 %v467_v15  ;;  %v147_v28 = vld [vmem:[%s631_s3 + $0x28] sm:$0xff]  ;;  %v149_v31 = vld [vmem:[%s631_s3 + $0x38] sm:$0xff]  ;;  %v343_v33 = vld [vmem:[%s632_s2] ss:$0 sm:$0xff] }
   0x9   :  { %450 = vmatpush3.bf16.msra.mxu0 %v447_v5  ;;  %472 = vmatprep.subr.bf16.mxu1 %v471_v17  ;;  %v475_v29 = vpack.c.bf16 %v147_v28, %v146_v27  ;;  %v479_v32 = vpack.c.bf16 %v149_v31, %v148_v30  ;;  %v244_v42 = vld [vmem:[%s633_s5] sm:$0xff]  ;;  %v245_v43 = vld [vmem:[%s633_s5 + $0x8] sm:$0xff]  ;;  %v246_v45 = vld [vmem:[%s633_s5 + $0x10] sm:$0xff] }
   0xa   :  { %452 = vmatprep.subr.bf16.mxu0 %v451_v9  ;;  %v483_v44 = vpack.c.bf16 %v245_v43, %v244_v42  ;;  %v247_v46 = vld [vmem:[%s633_s5 + $0x18] sm:$0xff]  ;;  %v347_v48 = vld [vmem:[%s634_s4] ss:$0 sm:$0xff] }
   0xb   :  { %v487_v47 = vpack.c.bf16 %v247_v46, %v246_v45  ;;  %v350_v57 = vld [vmem:[%s635_s6] ss:$0 sm:$0xff] }
   0xc   :  { %474 = vmatpush3.bf16.msra.mxu1 %v471_v17 }
   0xd   :  { %454 = vmatpush3.bf16.msra.mxu0 %v451_v9  ;;  %476 = vmatprep.subr.bf16.mxu1 %v475_v29 }
   0xe   :  { %456 = vmatprep.subr.bf16.mxu0 %v455_v18 }
  0x10   :  { %478 = vmatpush3.bf16.msra.mxu1 %v475_v29 }
  0x11   :  { %458 = vmatpush3.bf16.msra.mxu0 %v455_v18  ;;  %480 = vmatprep.subr.bf16.mxu1 %v479_v32 }
  0x12   :  { %460 = vmatprep.subr.bf16.mxu0 %v459_v21 }
  0x14   :  { %482 = vmatpush3.bf16.msra.mxu1 %v479_v32 }
  0x15   :  { %462 = vmatpush3.bf16.msra.mxu0 %v459_v21  ;;  %484 = vmatprep.subr.bf16.mxu1 %v483_v44 }
  0x16   :  { %464 = vmatprep.subr.bf16.mxu0 %v463_v24 }
  0x19   :  { %466 = vmatpush3.bf16.msra.mxu0 %v463_v24 }
  0x1a   :  { %408 = vmatprep.subr.msk.mxu0 %vm57_vm1, %v43_v25 }
  0x1d   :  { %409 = vmatpush3.msk.msra.mxu0 %vm57_vm1, %v43_v25 }
  0x1e   :  { %411 = vmatmul.mubr.msk.f32.vlgmr.msra.gmra.mrb[0].mxu0 %vm50_vm0, %v30_v26 }
  0xf1   :  { %v412_v34 = vpop.f32.mrb[0].mxu0 }
  0xf2   :  { %v133_v35 = vadd.f32 %v412_v34, %v343_v33  ;;  %v127_v36 = vpop.f32.mrb[1].mxu0 }
  0xf3   :  { %v128_v37 = vadd.f32 %v343_v33, %v127_v36 }
  0xf4   :  { %v139_v38 = vmul.f32 0.01, %v133_v35  ;;  %vm137_vm2 = vcmp.ge.f32.partialorder %v133_v35, 0.0 }
  0xf5   :  { %vm136_vm3 = vcmp.ge.f32.partialorder %v128_v37, 0.0  ;;  %v138_v39 = vmul.f32 0.01, %v128_v37 }
  0xf6   :  { %v141_v41 = vsel %vm137_vm2, %v133_v35, %v139_v38 }
  0xf7   :  { %v140_v40 = vsel %vm136_vm3, %v128_v37, %v138_v39 }
  0xf8   :  { %429 = vmatprep.mubr.msk.f32.mxu1 %vm156_vm4, %v140_v40 }
  0xf9   :  { %430 = vmatmul.mubr.msk.f32.vlgmr.msra.gmra.mrb[0].mxu1 %vm156_vm4, %v141_v41 }
  0xfa   :  { %486 = vmatpush3.bf16.msra.mxu1 %v483_v44 }
  0xfb   :  { %488 = vmatprep.subr.bf16.mxu1 %v487_v47 }
  0xfe   :  { %490 = vmatpush3.bf16.msra.mxu1 %v487_v47 }
 0x1cc   :  { %v431_v49 = vpop.f32.mrb[0].mxu1 }
 0x1cd   :  { %v235_v50 = vadd.f32 %v431_v49, %v347_v48  ;;  %v229_v51 = vpop.f32.mrb[1].mxu1 }
 0x1ce   :  { %v230_v52 = vadd.f32 %v347_v48, %v229_v51 }
 0x1cf   :  { %v241_v53 = vmul.f32 0.01, %v235_v50  ;;  %vm239_vm5 = vcmp.ge.f32.partialorder %v235_v50, 0.0 }
 0x1d0   :  { %vm238_vm6 = vcmp.ge.f32.partialorder %v230_v52, 0.0  ;;  %v240_v54 = vmul.f32 0.01, %v230_v52 }
 0x1d1   :  { %v243_v56 = vsel %vm239_vm5, %v235_v50, %v241_v53 }
 0x1d2   :  { %v242_v55 = vsel %vm238_vm6, %v230_v52, %v240_v54 }
 0x1d3   :  { %440 = vmatprep.mubr.msk.f32.mxu1 %vm254_vm7, %v242_v55 }
 0x1d4   :  { %441 = vmatmul.mubr.msk.f32.vlgmr.msra.gmra.mrb[2].mxu1 %vm254_vm7, %v243_v56 }
 0x2a7   :  { %v442_v58 = vpop.f32.mrb[2].mxu1 }
 0x2a8   :  { %v333_v59 = vadd.f32 %v442_v58, %v350_v57  ;;  %v327_v60 = vpop.f32.mrb[3].mxu1 }
 0x2a9   :  { %v328_v61 = vadd.f32 %v350_v57, %v327_v60 }
 0x2aa   :  { %338 = vst.msk [vmem:[%s636_s7 + $0x8] sm:$0xff] %vm336_vm8, %v333_v59 }
 0x2ab   :  { %337 = vst.msk [vmem:[%s636_s7] sm:$0xff] %vm336_vm8, %v328_v61 }

</bundles_post_ra>
